<compile_context>
chip_gen: v7x
topology: tpu7x:2x2x1
jax: 0.10.0
libtpu: 0.0.40
codegen_flags: <defaults>
</compile_context>

<pallas_src>
import functools

import jax
import jax.numpy as jnp
from jax.experimental import pallas as pl
from jax.experimental.pallas import tpu as pltpu


def linear_t_kernel(w_ref, xt_ref, b_ref, ot_ref):
    # w_ref : (N, K)       resident weight (same block every grid step)
    # xt_ref: (K, tile_m)  lane-dense activation tile
    # b_ref : (N, 1)       bias, broadcast across lanes inside the kernel
    # ot_ref: (N, tile_m)  lane-dense output tile (unmasked stores)
    ot_ref[...] = (
        jnp.dot(w_ref[...], xt_ref[...], preferred_element_type=jnp.float32)
        + b_ref[...]
    )


@functools.partial(jax.jit, static_argnames=("tile_m",))
def pallas_linear(x, weight, bias, *, tile_m=2048):
    """y = x @ weight.T + bias  (torch.nn.Linear semantics).

    x:      (B, S, K) float32
    weight: (N, K)    float32  (PyTorch layout, used as-is -- no transpose)
    bias:   (N,)      float32
    returns (B, S, N) float32
    """
    B, S, K = x.shape
    N = weight.shape[0]
    M = B * S

    # Layout plumbing: present x as (K, M) so M rides the 128-lane axis.
    xT = jnp.transpose(x.reshape(M, K))          # (K, M)

    # M tiles must be multiples of 128 lanes; pad M up and slice afterwards.
    if M < tile_m:
        tile_m = max(128, pl.cdiv(M, 128) * 128)
    m_pad = pl.cdiv(M, tile_m) * tile_m
    if m_pad != M:
        xT = jnp.pad(xT, ((0, 0), (0, m_pad - M)))

    b2d = bias.reshape(N, 1)                     # lane-broadcast inside kernel
    grid = (m_pad // tile_m,)

    cost = pl.CostEstimate(
        flops=2 * M * K * N + M * N,
        transcendentals=0,
        bytes_accessed=4 * (K * m_pad + N * K + N + N * m_pad),
    )

    outT = pl.pallas_call(
        linear_t_kernel,
        out_shape=jax.ShapeDtypeStruct((N, m_pad), jnp.float32),
        grid_spec=pltpu.PrefetchScalarGridSpec(
            num_scalar_prefetch=0,
            grid=grid,
            in_specs=[
                pl.BlockSpec((N, K), lambda i: (0, 0)),       # weight (resident)
                pl.BlockSpec((K, tile_m), lambda i: (0, i)),  # x^T, tiled over M
                pl.BlockSpec((N, 1), lambda i: (0, 0)),       # bias (resident)
            ],
            out_specs=pl.BlockSpec((N, tile_m), lambda i: (0, i)),
        ),
        compiler_params=pltpu.CompilerParams(
            dimension_semantics=("parallel",),   # shard M tiles across TCs (v7x)
        ),
        cost_estimate=cost,
    )(weight, xT, b2d)

    # Undo the layout plumbing: (N, m_pad) -> (M, N) -> (B, S, N).
    return jnp.transpose(outT[:, :M]).reshape(B, S, N)


if __name__ == "__main__":
    key = jax.random.PRNGKey(0)
    kx, kw, kb = jax.random.split(key, 3)

    B, S, K, N = 2, 8, 4, 6

    # Deterministic params (mimics nn.Linear uniform(-1/sqrt(K), 1/sqrt(K))).
    bound = 1.0 / jnp.sqrt(jnp.float32(K))
    weight = jax.random.uniform(kw, (N, K), jnp.float32, -bound, bound)
    bias = jax.random.uniform(kb, (N,), jnp.float32, -bound, bound)

    # Small rank-3 input matching the PyTorch module's MatMul_F32_R3 usage.
    x = jax.random.normal(kx, (B, S, K), jnp.float32)

    y = pallas_linear(x, weight, bias)
    jax.block_until_ready(y)
    y_ref = jnp.einsum("bsk,nk->bsn", x, weight) + bias
    assert y.shape == (B, S, N)
    assert jnp.allclose(y, y_ref, atol=1e-5, rtol=1e-5)

    # Second check exercising the multi-step grid / pipelined path (M = 4096).
    kx2 = jax.random.fold_in(kx, 1)
    x_big = jax.random.normal(kx2, (4, 1024, K), jnp.float32)
    y_big = pallas_linear(x_big, weight, bias)
    jax.block_until_ready(y_big)
    y_big_ref = jnp.einsum("bsk,nk->bsn", x_big, weight) + bias
    assert jnp.allclose(y_big, y_big_ref, atol=1e-5, rtol=1e-5)

    print("KERNEL_OK")
</pallas_src>

<mosaic_0001>
module attributes {stable_mosaic.version = 11 : i64} {
  func.func @linear_t_kernel(%arg0: i32, %arg1: memref<6x4xf32, #tpu.memory_space<vmem>>, %arg2: memref<4x128xf32, #tpu.memory_space<vmem>>, %arg3: memref<6x1xf32, #tpu.memory_space<vmem>>, %arg4: memref<6x128xf32, #tpu.memory_space<vmem>>) attributes {dimension_semantics = [#tpu.dimension_semantics<parallel>], iteration_bounds = array<i64: 1>, scalar_prefetch = 0 : i64, scratch_operands = 0 : i64, tpu.core_type = #tpu.core_type<tc>, window_params = [{pipeline_mode = #tpu.pipeline_mode<synchronous>, transform_indices = @transform_0, window_bounds = array<i64: 6, 4>}, {transform_indices = @transform_1, window_bounds = array<i64: 4, 128>}, {pipeline_mode = #tpu.pipeline_mode<synchronous>, transform_indices = @transform_2, window_bounds = array<i64: 6, 1>}, {transform_indices = @transform_3, window_bounds = array<i64: 6, 128>}]} {
    %c0 = arith.constant 0 : index
    %c0_0 = arith.constant 0 : index
    %0 = vector.load %arg1[%c0, %c0_0] : memref<6x4xf32, #tpu.memory_space<vmem>>, vector<6x4xf32>
    %c0_1 = arith.constant 0 : index
    %c0_2 = arith.constant 0 : index
    %1 = vector.load %arg2[%c0_1, %c0_2] : memref<4x128xf32, #tpu.memory_space<vmem>>, vector<4x128xf32>
    %cst = arith.constant dense<0.000000e+00> : vector<6x128xf32>
    %2 = tpu.matmul %0, %1, %cst {dimension_numbers = #tpu.dot_dimension_numbers<[1], [0], [0], [1], [0, 0, 1, 1], [], []>} : vector<6x4xf32>, vector<4x128xf32>, vector<6x128xf32> -> vector<6x128xf32>
    %c0_3 = arith.constant 0 : index
    %c0_4 = arith.constant 0 : index
    %3 = vector.load %arg3[%c0_3, %c0_4] : memref<6x1xf32, #tpu.memory_space<vmem>>, vector<6x1xf32>
    %4 = vector.broadcast %3 : vector<6x1xf32> to vector<6x128xf32>
    %5 = arith.addf %2, %4 : vector<6x128xf32>
    %c0_5 = arith.constant 0 : index
    %c0_6 = arith.constant 0 : index
    %6 = vector.load %arg4[%c0_5, %c0_6] : memref<6x128xf32, #tpu.memory_space<vmem>>, vector<6x128xf32>
    tpu.vector_store %arg4[%c0_5, %c0_6], %5 {strides = array<i32>} : memref<6x128xf32, #tpu.memory_space<vmem>>, vector<6x128xf32>,
    return
  }
  func.func @transform_0(%arg0: i32) -> (i32, i32) {
    %c0_i32 = arith.constant 0 : i32
    %c0_i32_0 = arith.constant 0 : i32
    %c0_i32_1 = arith.constant 0 : i32
    return %c0_i32, %c0_i32_0 : i32, i32
  }
  func.func @transform_1(%arg0: i32) -> (i32, i32) {
    %c0_i32 = arith.constant 0 : i32
    %c0_i32_0 = arith.constant 0 : i32
    return %c0_i32, %arg0 : i32, i32
  }
  func.func @transform_2(%arg0: i32) -> (i32, i32) {
    %c0_i32 = arith.constant 0 : i32
    %c0_i32_0 = arith.constant 0 : i32
    %c0_i32_1 = arith.constant 0 : i32
    return %c0_i32, %c0_i32_0 : i32, i32
  }
  func.func @transform_3(%arg0: i32) -> (i32, i32) {
    %c0_i32 = arith.constant 0 : i32
    %c0_i32_0 = arith.constant 0 : i32
    return %c0_i32, %arg0 : i32, i32
  }
}

</mosaic_0001>

<bundles_post_ra>
// kernel: pallas_linear.1
= control target key start
LH: loop header
LB: loop body
LE: loop exit
PB: predicated region body
PF: predicated region fallthrough
CT: control target
= control target key end

     0   :  { %vm26_vm0 = vcmask 1043456   ;;  %vm22_vm1 = vcmask 31744   ;;  %v118_v0 = vmov 0.0   ;;  %vm119_vm2 = vmmov 0   ;;  %s153_s1 = inlined_call_operand.vmem [shape: f32[4,128], index: 1, kind: input, shape index: {}]   ;;  %s154_s0 = inlined_call_operand.vmem [shape: f32[6,4], index: 0, kind: input, shape index: {}]   ;;  %s155_s2 = inlined_call_operand.vmem [shape: f32[6,1], index: 2, kind: input, shape index: {}]   ;;  %s156_s3 = inlined_call_operand.vmem [shape: f32[6,128], index: 3, kind: output, shape index: {}]  }
   0x1   :  { %109 = vmatprep.subr.mxu0 %v118_v0  ;;  %v15_v1 = vld [vmem:[%s153_s1] sm:$0xf]  ;;  %111 = vmatprep.mubr.msk.f32.mxu0 %vm119_vm2, %v118_v0  ;;  %v120_v3 = vmov 0  }
   0x2   :  { %v14_v2 = vld [vmem:[%s154_s0] sm:$0x3f]  ;;  %110 = vmatpush3.msk.msra.mxu0 %vm26_vm0, %v15_v1  ;;  %117 = vset.pattern.permute.xlu0 %v120_v3 }
   0x3   :  { %v16_v4 = vld [vmem:[%s155_s2] sm:$0x3f]  ;;  %112 = vmatmul.mubr.msk.f32.vlgmr.msra.gmra.mrb[0].mxu0 %vm22_vm1, %v14_v2 }
   0x4   :  { %19 = vperm.xlu0 %117, %v16_v4  }
  0x83   :  { %v20_v5 = vpop.permute.xlu0 %19 }
  0xd6   :  { %v96_v6 = vpop.f32.mrb[0].mxu0 }
  0xd7   :  { %v97_v7 = vadd.f32 %v96_v6, %v20_v5  ;;  %v113_v8 = vpop.f32.mrb[1].mxu0 }
  0xd9   :  { %100 = vst [vmem:[%s156_s3] sm:$0x3f] %v97_v7 }

</bundles_post_ra>
